<compile_context>
chip_gen: v6e
topology: v6e:2x2x1
jax: 0.10.0
libtpu: 0.0.40
codegen_flags: <defaults>
</compile_context>

<pallas_src>
import functools

import jax
import jax.numpy as jnp
from jax.experimental import pallas as pl
from jax.experimental.pallas import tpu as pltpu


class DataConfig:
    OUTPUT_CLASSES = 32  # number of classes (last dim of pred)


def _ce_loss_kernel(pred_ref, oh_ref, out_ref, *, n_rows, tiles_per_core):
    """Grid = (core_split, row_tiles).  Each step handles a (TR, C) slab.

    Per-step, the (TR,) loss column is reduced to a scalar and accumulated
    into the resident per-core output block (every element of the (1, 8, 128)
    block carries the running per-core partial sum).
    """
    ci = pl.program_id(0)            # core-split axis ("parallel")
    ti = pl.program_id(1)            # row-tile axis   ("arbitrary")

    tile_rows = pred_ref.shape[0]
    row_start = (ci * tiles_per_core + ti) * tile_rows

    @pl.when(ti == 0)
    def _():
        out_ref[...] = jnp.zeros_like(out_ref)

    # Skip fully-duplicated clamped tail tiles (only possible when the block
    # count does not divide evenly across core splits).
    @pl.when(row_start < n_rows)
    def _():
        row_ids = row_start + jax.lax.broadcasted_iota(
            jnp.int32, (tile_rows, 1), 0)
        valid = row_ids < n_rows                            # (TR, 1) bool

        x = pred_ref[...].astype(jnp.float32)               # (TR, C)
        x = jnp.where(valid, x, 0.0)                        # kill garbage tail rows

        oh = oh_ref[...].astype(jnp.float32)                # (TR, C) one-hot

        # Numerically-stable log-softmax pieces along the class (lane) axis.
        m = jnp.max(x, axis=-1, keepdims=True)              # (TR, 1)
        shifted = x - m
        lse = jnp.log(jnp.sum(jnp.exp(shifted), axis=-1, keepdims=True))

        # sum_c -onehot * log_softmax = onehot_sum * lse - <onehot, shifted>
        picked = jnp.sum(oh * shifted, axis=-1, keepdims=True)   # (TR, 1)
        oh_sum = jnp.sum(oh, axis=-1, keepdims=True)             # (TR, 1)

        loss_col = jnp.where(valid, oh_sum * lse - picked, 0.0)  # (TR, 1)
        out_ref[...] += jnp.sum(loss_col)                        # scalar per step


def ce_loss(pred: jnp.ndarray, labels: jnp.ndarray, *,
            row_tile: int = 8192, num_core_splits: int = 1) -> jnp.ndarray:
    """Pallas TPU implementation of CE_Loss.forward.

    pred:   (N, C) float array of logits (C == DataConfig.OUTPUT_CLASSES)
    labels: (N,)   int array of class indices
    returns scalar float32 loss == mean(-one_hot(labels) * log_softmax(pred))

    row_tile must be a multiple of 32 (it is clamped to N when N is smaller,
    in which case the full-dimension block rule applies).  Set
    num_core_splits=2 on v7x (2 TensorCores); leave at 1 on v5e/v6e.
    """
    n, c = pred.shape
    assert c == DataConfig.OUTPUT_CLASSES
    assert num_core_splits >= 1

    # Lane-dense label information: compact int8 one-hot.  Building it costs
    # ~N*128 bytes of HBM writes (vs. the N*512-byte padded (N,1) int32 stream
    # it replaces) and needs no in-kernel relayout.
    onehot = jax.nn.one_hot(labels, c, dtype=jnp.int8)

    # Either the full row count (full-dim block is always legal) or a multiple
    # of 32 (covers the f32/bf16/int8 sublane tiling of both inputs).
    row_tile = min(row_tile, n)

    num_blocks = pl.cdiv(n, row_tile)
    tiles_per_core = pl.cdiv(num_blocks, num_core_splits)

    def row_block_map(ci, ti):
        # Clamp so the DMA never addresses past the array; duplicated clamped
        # tiles are skipped inside the kernel via pl.when(row_start < n).
        return (jnp.minimum(ci * tiles_per_core + ti, num_blocks - 1), 0)

    kernel = functools.partial(_ce_loss_kernel, n_rows=n,
                               tiles_per_core=tiles_per_core)

    bytes_accessed = (n * c * pred.dtype.itemsize      # logits stream
                      + n * c                          # int8 one-hot stream
                      + num_core_splits * 8 * 128 * 4)  # tiny output
    out = pl.pallas_call(
        kernel,
        out_shape=jax.ShapeDtypeStruct((num_core_splits, 8, 128), jnp.float32),
        grid=(num_core_splits, tiles_per_core),
        in_specs=[
            pl.BlockSpec((row_tile, c), row_block_map),
            pl.BlockSpec((row_tile, c), row_block_map),
        ],
        out_specs=pl.BlockSpec((1, 8, 128), lambda ci, ti: (ci, 0, 0)),
        compiler_params=pltpu.CompilerParams(
            # leading axis "parallel" -> both TensorCores stream rows on v7x;
            # the row-tile axis is the accumulation axis.
            dimension_semantics=("parallel", "arbitrary"),
            vmem_limit_bytes=32 * 1024 * 1024,
        ),
        cost_estimate=pl.CostEstimate(
            flops=8 * n * c,
            transcendentals=n * (c + 1),
            bytes_accessed=bytes_accessed,
        ),
    )(pred, onehot)

    per_core = out[:, 0, 0]                              # per-core partial sums
    return jnp.sum(per_core) / jnp.float32(n * c)


def _reference(pred, labels):
    one_hot = jax.nn.one_hot(labels, DataConfig.OUTPUT_CLASSES, dtype=jnp.float32)
    return jnp.mean(-one_hot * jax.nn.log_softmax(pred.astype(jnp.float32), axis=-1))


if __name__ == "__main__":
    key = jax.random.PRNGKey(0)
    C = DataConfig.OUTPUT_CLASSES

    # Case 1: small aligned batch, f32 (single full-dim block).
    # Case 2: ragged batch, f32 (full-dim block, N not a multiple of 8).
    # Case 3: bf16 logits, multi-block grid, 2-way core split with an odd
    #         block count (exercises masked partial block + duplicate-tile
    #         skip + the "parallel" core-split axis).
    cases = [
        dict(n=16, dtype=jnp.float32, kwargs={}),
        dict(n=100, dtype=jnp.float32, kwargs={}),
        dict(n=150, dtype=jnp.bfloat16,
             kwargs=dict(row_tile=32, num_core_splits=2)),
    ]

    for case in cases:
        n = case["n"]
        key, k_pred, k_lab = jax.random.split(key, 3)
        pred = jax.random.normal(k_pred, (n, C), dtype=case["dtype"])
        labels = jax.random.randint(k_lab, (n,), 0, C, dtype=jnp.int32)

        loss = jax.block_until_ready(ce_loss(pred, labels, **case["kwargs"]))
        ref = _reference(pred, labels)
        assert jnp.allclose(loss, ref, rtol=1e-5, atol=1e-6), (n, loss, ref)

    print("KERNEL_OK")
</pallas_src>

<mosaic_0001>
module attributes {stable_mosaic.version = 11 : i64} {
  func.func @_ce_loss_kernel(%arg0: i32, %arg1: i32, %arg2: memref<16x32xf32, #tpu.memory_space<vmem>>, %arg3: memref<16x32xi8, #tpu.memory_space<vmem>>, %arg4: memref<1x8x128xf32, #tpu.memory_space<vmem>>) attributes {dimension_semantics = [#tpu.dimension_semantics<parallel>, #tpu.dimension_semantics<arbitrary>], iteration_bounds = array<i64: 1, 1>, scalar_prefetch = 0 : i64, scratch_operands = 0 : i64, tpu.core_type = #tpu.core_type<tc>, window_params = [{transform_indices = @transform_0, window_bounds = array<i64: 16, 32>}, {transform_indices = @transform_1, window_bounds = array<i64: 16, 32>}, {transform_indices = @transform_2, window_bounds = array<i64: 1, 8, 128>}]} {
    %c1_i32 = arith.constant 1 : i32
    %0 = arith.muli %arg0, %c1_i32 : i32
    %1 = arith.addi %0, %arg1 : i32
    %c16_i32 = arith.constant 16 : i32
    %2 = arith.muli %1, %c16_i32 : i32
    %c0_i32 = arith.constant 0 : i32
    %3 = arith.cmpi eq, %arg1, %c0_i32 : i32
    %4 = arith.extui %3 : i1 to i32
    %c0_i32_0 = arith.constant 0 : i32
    %5 = arith.cmpi ne, %4, %c0_i32_0 : i32
    scf.if %5 {
      %cst = arith.constant 0.000000e+00 : f32
      %9 = vector.broadcast %cst : f32 to vector<1x8x128xf32>
      %c0 = arith.constant 0 : index
      %c0_3 = arith.constant 0 : index
      %c0_4 = arith.constant 0 : index
      %10 = vector.load %arg4[%c0, %c0_3, %c0_4] : memref<1x8x128xf32, #tpu.memory_space<vmem>>, vector<1x8x128xf32>
      tpu.vector_store %arg4[%c0, %c0_3, %c0_4], %9 {strides = array<i32>} : memref<1x8x128xf32, #tpu.memory_space<vmem>>, vector<1x8x128xf32>,
    } else {
    }
    %c16_i32_1 = arith.constant 16 : i32
    %6 = arith.cmpi slt, %2, %c16_i32_1 : i32
    %7 = arith.extui %6 : i1 to i32
    %c0_i32_2 = arith.constant 0 : i32
    %8 = arith.cmpi ne, %7, %c0_i32_2 : i32
    scf.if %8 {
      %9 = tpu.iota {dimensions = array<i32: 0>} : vector<16x1xi32>
      %10 = vector.broadcast %2 : i32 to vector<16x1xi32>
      %11 = arith.addi %10, %9 : vector<16x1xi32>
      %c16_i32_3 = arith.constant 16 : i32
      %12 = vector.broadcast %c16_i32_3 : i32 to vector<16x1xi32>
      %13 = arith.cmpi slt, %11, %12 : vector<16x1xi32>
      %c0 = arith.constant 0 : index
      %c0_4 = arith.constant 0 : index
      %14 = vector.load %arg2[%c0, %c0_4] : memref<16x32xf32, #tpu.memory_space<vmem>>, vector<16x32xf32>
      %cst = arith.constant 0.000000e+00 : f32
      %15 = vector.shape_cast %13 : vector<16x1xi1> to vector<16x1xi1>
      %16 = vector.broadcast %15 : vector<16x1xi1> to vector<16x32xi1>
      %17 = vector.broadcast %cst : f32 to vector<16x32xf32>
      %18 = arith.select %16, %14, %17 : vector<16x32xi1>, vector<16x32xf32>
      %c0_5 = arith.constant 0 : index
      %c0_6 = arith.constant 0 : index
      %19 = vector.load %arg3[%c0_5, %c0_6] : memref<16x32xi8, #tpu.memory_space<vmem>>, vector<16x32xi8>
      %20 = arith.sitofp %19 : vector<16x32xi8> to vector<16x32xf32>
      %cst_7 = arith.constant dense<0xFF800000> : vector<16xf32>
      %21 = vector.multi_reduction <maximumf>, %18, %cst_7 [1] : vector<16x32xf32> to vector<16xf32>
      %22 = vector.shape_cast %21 : vector<16xf32> to vector<16x1xf32>
      %23 = vector.broadcast %22 : vector<16x1xf32> to vector<16x32xf32>
      %24 = arith.subf %18, %23 : vector<16x32xf32>
      %25 = math.exp %24 : vector<16x32xf32>
      %cst_8 = arith.constant dense<0.000000e+00> : vector<16xf32>
      %26 = vector.multi_reduction <add>, %25, %cst_8 [1] : vector<16x32xf32> to vector<16xf32>
      %27 = vector.shape_cast %26 : vector<16xf32> to vector<16x1xf32>
      %28 = math.log %27 : vector<16x1xf32>
      %29 = arith.mulf %20, %24 : vector<16x32xf32>
      %cst_9 = arith.constant dense<0.000000e+00> : vector<16xf32>
      %30 = vector.multi_reduction <add>, %29, %cst_9 [1] : vector<16x32xf32> to vector<16xf32>
      %31 = vector.shape_cast %30 : vector<16xf32> to vector<16x1xf32>
      %cst_10 = arith.constant dense<0.000000e+00> : vector<16xf32>
      %32 = vector.multi_reduction <add>, %20, %cst_10 [1] : vector<16x32xf32> to vector<16xf32>
      %33 = vector.shape_cast %32 : vector<16xf32> to vector<16x1xf32>
      %34 = arith.mulf %33, %28 : vector<16x1xf32>
      %35 = arith.subf %34, %31 : vector<16x1xf32>
      %cst_11 = arith.constant 0.000000e+00 : f32
      %36 = vector.broadcast %cst_11 : f32 to vector<16x1xf32>
      %37 = arith.select %13, %35, %36 : vector<16x1xi1>, vector<16x1xf32>
      %c0_12 = arith.constant 0 : index
      %c0_13 = arith.constant 0 : index
      %c0_14 = arith.constant 0 : index
      %38 = vector.load %arg4[%c0_12, %c0_13, %c0_14] : memref<1x8x128xf32, #tpu.memory_space<vmem>>, vector<1x8x128xf32>
      %39 = vector.shape_cast %37 : vector<16x1xf32> to vector<1x16x1xf32>
      %cst_15 = arith.constant dense<0.000000e+00> : vector<1xf32>
      %40 = vector.multi_reduction <add>, %39, %cst_15 [1, 2] : vector<1x16x1xf32> to vector<1xf32>
      %41 = vector.shape_cast %40 : vector<1xf32> to vector<1x1x1xf32>
      %42 = vector.extract %41[0, 0, 0] : f32 from vector<1x1x1xf32>
      %43 = vector.broadcast %42 : f32 to vector<1x8x128xf32>
      %44 = arith.addf %38, %43 : vector<1x8x128xf32>
      %c0_16 = arith.constant 0 : index
      %c0_17 = arith.constant 0 : index
      %c0_18 = arith.constant 0 : index
      %45 = vector.load %arg4[%c0_16, %c0_17, %c0_18] : memref<1x8x128xf32, #tpu.memory_space<vmem>>, vector<1x8x128xf32>
      tpu.vector_store %arg4[%c0_16, %c0_17, %c0_18], %44 {strides = array<i32>} : memref<1x8x128xf32, #tpu.memory_space<vmem>>, vector<1x8x128xf32>,
    } else {
    }
    return
  }
  func.func @transform_0(%arg0: i32, %arg1: i32) -> (i32, i32) {
    %c1_i32 = arith.constant 1 : i32
    %0 = arith.muli %arg0, %c1_i32 : i32
    %1 = arith.addi %0, %arg1 : i32
    %c0_i32 = arith.constant 0 : i32
    %2 = arith.minsi %1, %c0_i32 : i32
    %c0_i32_0 = arith.constant 0 : i32
    %c0_i32_1 = arith.constant 0 : i32
    return %2, %c0_i32_0 : i32, i32
  }
  func.func @transform_1(%arg0: i32, %arg1: i32) -> (i32, i32) {
    %c1_i32 = arith.constant 1 : i32
    %0 = arith.muli %arg0, %c1_i32 : i32
    %1 = arith.addi %0, %arg1 : i32
    %c0_i32 = arith.constant 0 : i32
    %2 = arith.minsi %1, %c0_i32 : i32
    %c0_i32_0 = arith.constant 0 : i32
    %c0_i32_1 = arith.constant 0 : i32
    return %2, %c0_i32_0 : i32, i32
  }
  func.func @transform_2(%arg0: i32, %arg1: i32) -> (i32, i32, i32) {
    %c0_i32 = arith.constant 0 : i32
    %c0_i32_0 = arith.constant 0 : i32
    %c0_i32_1 = arith.constant 0 : i32
    return %arg0, %c0_i32, %c0_i32_0 : i32, i32, i32
  }
}

</mosaic_0001>

<bundles_post_ra>
// kernel: tpu_custom_call.1
= control target key start
LH: loop header
LB: loop body
LE: loop exit
PB: predicated region body
PF: predicated region fallthrough
CT: control target
= control target key end

     0   :  { %7 = vsyncpa [#allocation3], 0  ;;  %s300_s0 = inlined_call_operand.hbm [shape: f32[16,32], index: 0, kind: input, shape index: {}]   ;;  %s301_s1 = inlined_call_operand.hbm [shape: s8[16,32], index: 1, kind: input, shape index: {}]   ;;  %s302_s2 = inlined_call_operand.hbm [shape: f32[1,8,128], index: 2, kind: output, shape index: {}]  }
   0x1   :  { %8 = vsyncpa [#allocation6], 0 }
   0x2   :  { %9 = vsyncpa [#allocation4], 0  ;;  %s261_s9 = smov [#allocation2]  }
   0x3   :  { %s21_s10 = sshll.u32 %s261_s9, 4  ;;  %s22_s10 = int_to_ptr.vmem [resolvable:$true] %s21_s10 }
   0x4   :  { %s203_s11 = scalar_lea.vmem %s22_s10, 256  ;;  %p208_p1 = scmp.lt.s32.totalorder %s22_s10, %s22_s10 }
   0x5   :  { %p204_p0 = scmp.ne.s32.totalorder %s22_s10, %s203_s11  ;;  %p209_p2 = scmp.lt.s32.totalorder %s203_s11, %s203_s11 }
   0x7   :  { %p210_p3 = por %p209_p2, %p208_p1 }
   0x9   :  { %p211_p4 = pnand %p210_p3, %p204_p0 }
   0xb   :  { %214 = shalt.err (!%p211_p4)
}
   0xc   :  { %s262_s12 = smov 128   ;;  %s263_s13 = smov 8  }
   0xd   :  { %27 = dma.hbm_to_vmem [thread:$0]  %s300_s0, 256, %s22_s10, [#allocation3], %s262_s12, %s262_s12, %s263_s13  }
   0xe   :  { %s264_s16 = smov [#allocation5]  }
   0xf   :  { %s39_s17 = sshll.u32 %s264_s16, 4  ;;  %s40_s17 = int_to_ptr.vmem [resolvable:$true] %s39_s17 }
  0x10   :  { %s223_s18 = scalar_lea.vmem %s40_s17, 64  ;;  %p228_p6 = scmp.lt.s32.totalorder %s40_s17, %s40_s17 }
  0x11   :  { %p224_p5 = scmp.ne.s32.totalorder %s40_s17, %s223_s18  ;;  %p229_p7 = scmp.lt.s32.totalorder %s223_s18, %s223_s18 }
  0x13   :  { %p230_p8 = por %p229_p7, %p228_p6 }
  0x15   :  { %p231_p9 = pnand %p230_p8, %p224_p5 }
  0x17   :  { %234 = shalt.err (!%p231_p9)
}
  0x18   :  { %s265_s19 = smov 32   ;;  %s266_s20 = smov 2  }
  0x19   :  { %45 = dma.hbm_to_vmem [thread:$0]  %s301_s1, 64, %s40_s17, [#allocation6], %s265_s19, %s265_s19, %s266_s20  }
  0x1a   :  { %255 = dma.done.wait [#allocation3], 256  }
  0x1b   :  { %256 = vsyncadd [#allocation3], 4294967040 }
  0x1c   :  { %257 = dma.done.wait [#allocation6], 64  }
  0x1d   :  { %258 = vsyncadd [#allocation6], 4294967232  ;;  %vm93_vm0 = vcmask 261120   ;;  %v79_v0 = vld [vmem:[#allocation2] sm:$0xff]  ;;  %v80_v1 = vld [vmem:[#allocation2 + $0x8] sm:$0xff]  ;;  %vm137_vm1 = vcmask 7168  }
  0x1e   :  { %v94_v2 = vsel %vm93_vm0, %v79_v0, -inf  ;;  %v97_v3 = vsel %vm93_vm0, %v80_v1, -inf  ;;  %v174_v4 = vld [vmem:[#allocation5] sm:$0xf]   ;;  %s267_s0 = smov [#allocation7]  }
  0x1f   :  { %95 = vmax.xlane.f32.xlu0 %v94_v2  ;;  %v175_v5 = vunpack.c.0.s8 %v174_v4  ;;  %v176_v18 = vunpack.c.1.s8 %v174_v4  ;;  %s159_s1 = sshll.u32 %s267_s0, 4  ;;  %s160_s1 = int_to_ptr.vmem [resolvable:$true] %s159_s1 }
  0x20   :  { %s235_s24 = scalar_lea.vmem %s160_s1, 128  ;;  %p240_p11 = scmp.lt.s32.totalorder %s160_s1, %s160_s1 }
  0x21   :  { %v91_v6 = vcvt.s32.f32 %v175_v5  ;;  %v92_v21 = vcvt.s32.f32 %v176_v18  ;;  %p236_p10 = scmp.ne.s32.totalorder %s160_s1, %s235_s24  ;;  %p241_p12 = scmp.lt.s32.totalorder %s235_s24, %s235_s24 }
  0x23   :  { %98 = vmax.xlane.f32.xlu0 %v97_v3  ;;  %v124_v7 = vsel %vm93_vm0, %v91_v6, 0.0  ;;  %v127_v22 = vsel %vm93_vm0, %v92_v21, 0.0  ;;  %p242_p13 = por %p241_p12, %p240_p11 }
  0x25   :  { %p243_p0 = pnand %p242_p13, %p236_p10 }
  0x27   :  { %125 = vadd.xlane.f32.xlu0 %v124_v7 }
  0xa8   :  { %v96_v8 = vpop.xlane.xlu0 %95 }
  0xa9   :  { %v100_v9 = vsub.f32 %v79_v0, %v96_v8 }
  0xab   :  { %v102_v10 = vmul.f32 1.442695, %v100_v9  ;;  %v116_v11 = vmul.f32 %v100_v9, %v91_v6 }
  0xac   :  { %v99_v12 = vpop.xlane.xlu0 %98 }
  0xad   :  { %187 = vpow2.f32 %v102_v10  ;;  %v101_v13 = vsub.f32 %v80_v1, %v99_v12  ;;  %v118_v14 = vsel %vm93_vm0, %v116_v11, 0.0 }
  0xae   :  { %119 = vadd.xlane.f32.xlu0 %v118_v14 }
  0xaf   :  { %v104_v15 = vmul.f32 1.442695, %v101_v13  ;;  %v117_v23 = vmul.f32 %v101_v13, %v92_v21 }
  0xb0   :  { %v126_v28 = vpop.xlane.xlu0 %125 }
  0xb1   :  { %189 = vpow2.f32 %v104_v15  ;;  %v121_v24 = vsel %vm93_vm0, %v117_v23, 0.0 }
  0xba   :  { %v188_v16 = vpop.eup %187 }
  0xbb   :  { %v106_v17 = vsel %vm93_vm0, %v188_v16, 0.0 }
  0xbc   :  { %107 = vadd.xlane.f32.xlu1 %v106_v17 }
  0xbe   :  { %v190_v19 = vpop.eup %189 }
  0xbf   :  { %v109_v20 = vsel %vm93_vm0, %v190_v19, 0.0 }
  0xc0   :  { %110 = vadd.xlane.f32.xlu1 %v109_v20 }
  0xc4   :  { %128 = vadd.xlane.f32.xlu1 %v127_v22 }
  0xc8   :  { %122 = vadd.xlane.f32.xlu1 %v121_v24 }
 0x137   :  { %v120_v34 = vpop.xlane.xlu0 %119 }
 0x145   :  { %v108_v25 = vpop.xlane.xlu1 %107 }
 0x146   :  { %191 = vlog2.f32 %v108_v25 }
 0x149   :  { %v111_v26 = vpop.xlane.xlu1 %110 }
 0x14a   :  { %193 = vlog2.f32 %v111_v26 }
 0x14d   :  { %v129_v30 = vpop.xlane.xlu1 %128 }
 0x151   :  { %v123_v37 = vpop.xlane.xlu1 %122 }
 0x153   :  { %v192_v27 = vpop.eup %191 }
 0x154   :  { %v113_v29 = vmul.f32 0.6931472, %v192_v27 }
 0x156   :  { %v130_v31 = vmul.f32 %v126_v28, %v113_v29 }
 0x157   :  { %v194_v32 = vpop.eup %193 }
 0x158   :  { %v115_v33 = vmul.f32 0.6931472, %v194_v32  ;;  %v132_v36 = vsub.f32 %v130_v31, %v120_v34 }
 0x15a   :  { %v131_v35 = vmul.f32 %v129_v30, %v115_v33  ;;  %v138_v39 = vsel %vm137_vm1, %v132_v36, 0.0 }
 0x15c   :  { %v133_v38 = vsub.f32 %v131_v35, %v123_v37 }
 0x15e   :  { %v139_v40 = vsel %vm137_vm1, %v133_v38, 0.0 }
 0x15f   :  { %v140_v41 = vadd.f32 %v139_v40, %v138_v39 }
 0x161   :  { %141 = vadd.xlane.f32.xlu0 %v140_v41 }
 0x1ea   :  { %v142_v42 = vpop.xlane.xlu0 %141 }
 0x1eb   :  { %v143_v43 = vrot.slane %v142_v42, 4 }
 0x1ed   :  { %v144_v44 = vadd.f32 %v143_v43, %v142_v42 }
 0x1ef   :  { %v145_v45 = vrot.slane %v144_v44, 2 }
 0x1f1   :  { %v146_v46 = vadd.f32 %v145_v45, %v144_v44 }
 0x1f3   :  { %v147_v47 = vrot.slane %v146_v46, 1 }
 0x1f5   :  { %v148_v48 = vadd.f32 %v147_v47, %v146_v46 }
 0x1f7   :  { %177 = vpush %v148_v48 }
 0x228   :  { %s178_s23 = spop %177 }
 0x229   :  { %v150_v49 = vstv %s178_s23 }
 0x22a   :  { %152 = vst [vmem:[#allocation7] sm:$0xff] %v150_v49 }
 0x22b   :  { %246 = shalt.err (!%p243_p0)
}
 0x22c   :  { %162 = dma.vmem_to_hbm [thread:$0]  %s160_s1, 128, %s302_s2, [#allocation4]  }
 0x22d   :  { %259 = dma.done.wait [#allocation4], 128  }
 0x22e   :  { %260 = vsyncadd [#allocation4], 4294967168 }
 0x22f   :  { %166 = vsyncpa [#allocation3], 1 }
 0x230   :  { %167 = vsyncpa [#allocation6], 1 }
 0x231   :  { %168 = vsyncpa [#allocation4], 1 }

</bundles_post_ra>
